<compile_context>
chip_gen: v5e
topology: v5e:2x2
jax: 0.10.0
libtpu: 0.0.40
codegen_flags: <defaults>
</compile_context>

<pallas_src>
import functools

import jax
import jax.numpy as jnp
from jax.experimental import pallas as pl
from jax.experimental.pallas import tpu as pltpu

LANES = 128                      # lane (minor) axis of a vreg
SUBLANES = 8                     # sublane axis of a vreg (32-bit rows)
TARGET_BLOCK_BYTES = 4 << 20     # ~4 MiB VMEM per block -> 16 MiB double-buffered in+out
VMEM_LIMIT_BYTES = 32 << 20      # raises v5e's 16 MiB scoped default; == default on v6e/v7x


def _hardtanh_kernel(x_ref, o_ref, *, min_val: float, max_val: float):
    x = x_ref[...]
    # Hardtanh(x) = max(min(x, max_val), min_val): two VALU ops, dtype preserved.
    # TODO(synk): for integer dtypes the bounds are truncated to the dtype,
    # which can differ from PyTorch for non-representable float bounds.
    lo = jnp.asarray(min_val, dtype=x.dtype)
    hi = jnp.asarray(max_val, dtype=x.dtype)
    o_ref[...] = jnp.minimum(jnp.maximum(x, lo), hi)


def _round_up(a: int, m: int) -> int:
    return ((a + m - 1) // m) * m


def _choose_block_rows(rows: int, row_vmem_bytes: int, packing: int) -> int:
    """Sublane-aligned row-block size.

    Targets ~TARGET_BLOCK_BYTES of VMEM per block (dtype-aware via
    row_vmem_bytes / packing) and guarantees >= 2 grid programs whenever the
    input is large enough to split, so v7x can use both TensorCores and the
    last block is not left nearly empty.
    """
    max_block_rows = max(
        packing, (TARGET_BLOCK_BYTES // row_vmem_bytes) // packing * packing
    )
    if rows < 2 * packing:
        return rows                      # too small to split: one full-extent block
    n_blocks = max(2, pl.cdiv(rows, max_block_rows))
    block_rows = _round_up(pl.cdiv(rows, n_blocks), packing)
    return min(block_rows, max_block_rows)


def _run_2d(x2d: jax.Array, min_val: float, max_val: float) -> jax.Array:
    rows, cols = x2d.shape
    itemsize = jnp.dtype(x2d.dtype).itemsize
    packing = SUBLANES * max(1, 4 // itemsize)        # 8 (f32/i32), 16 (bf16), 32 (i8)
    row_vmem_bytes = _round_up(cols, LANES) * itemsize  # VMEM cost of one row (lane-padded)
    block_rows = _choose_block_rows(rows, row_vmem_bytes, packing)
    grid = (pl.cdiv(rows, block_rows),)
    n = rows * cols
    return pl.pallas_call(
        functools.partial(
            _hardtanh_kernel, min_val=float(min_val), max_val=float(max_val)
        ),
        out_shape=jax.ShapeDtypeStruct((rows, cols), x2d.dtype),
        grid_spec=pltpu.PrefetchScalarGridSpec(
            num_scalar_prefetch=0,
            grid=grid,
            # Last dim is always full extent (legal for any width); row blocks
            # are packing-aligned or full extent. Partial final block (rows not
            # divisible by block_rows) is masked on writeback by Pallas.
            in_specs=[pl.BlockSpec((block_rows, cols), lambda i: (i, 0))],
            out_specs=pl.BlockSpec((block_rows, cols), lambda i: (i, 0)),
        ),
        compiler_params=pltpu.CompilerParams(
            dimension_semantics=("parallel",),   # lets a v7x megacore shard the grid
            vmem_limit_bytes=VMEM_LIMIT_BYTES,
        ),
        cost_estimate=pl.CostEstimate(
            flops=2 * n, transcendentals=0, bytes_accessed=2 * n * itemsize
        ),
    )(x2d)


def hardtanh(x: jax.Array, min_val: float = -1.0, max_val: float = 1.0) -> jax.Array:
    """Pallas TPU implementation of torch.nn.Hardtanh(min_val, max_val)."""
    assert max_val > min_val
    orig_shape = x.shape
    n = x.size
    if n == 0:
        return x

    if n % LANES == 0:
        # Fast path: contiguous reshape to [rows, 128] is free; lane-dense,
        # unmasked stores, HBM traffic is exactly read-once + write-once.
        rows = n // LANES
        out2d = _run_2d(x.reshape(rows, LANES), min_val, max_val)
        return out2d.reshape(orig_shape)

    # Ragged size (not a multiple of 128): no jnp.pad / slice HBM round trips.
    # Collapse leading dims (free, contiguous reshape) and keep the last dim as
    # a full-extent block dim; Pallas masks the partial lanes on writeback.
    cols = orig_shape[-1] if x.ndim >= 1 else 1
    itemsize = jnp.dtype(x.dtype).itemsize
    packing = SUBLANES * max(1, 4 // itemsize)
    if _round_up(cols, LANES) * itemsize * packing > TARGET_BLOCK_BYTES:
        # Extremely wide ragged last dim would blow past the VMEM block budget:
        # rare case, pad once to a lane-dense slab instead.
        rows = pl.cdiv(n, LANES)
        x_flat = jnp.pad(jnp.ravel(x), (0, rows * LANES - n))
        out = _run_2d(x_flat.reshape(rows, LANES), min_val, max_val)
        return out.reshape(-1)[:n].reshape(orig_shape)
    x2d = x.reshape(-1, cols)
    out2d = _run_2d(x2d, min_val, max_val)
    return out2d.reshape(orig_shape)


if __name__ == "__main__":
    key = jax.random.PRNGKey(0)
    k0, k1, k2 = jax.random.split(key, 3)

    # Default Hardtanh (min_val=-1, max_val=1) on an NCHW-style f32 input
    # (fast lane-dense path, grid split across >= 2 programs).
    x = 3.0 * jax.random.normal(k0, (2, 4, 16, 16), dtype=jnp.float32)
    out = jax.block_until_ready(hardtanh(x))
    ref = jnp.clip(x, -1.0, 1.0)
    assert out.shape == x.shape and out.dtype == x.dtype
    assert jnp.allclose(out, ref, atol=0.0, rtol=0.0)

    # Custom range (like nn.Hardtanh(-2, 2)) on a ragged-size input
    # (no pad/slice HBM round trips).
    y = 5.0 * jax.random.normal(k1, (3, 5, 7), dtype=jnp.float32)
    out2 = jax.block_until_ready(hardtanh(y, min_val=-2.0, max_val=2.0))
    ref2 = jnp.clip(y, -2.0, 2.0)
    assert out2.shape == y.shape and out2.dtype == y.dtype
    assert jnp.allclose(out2, ref2, atol=0.0, rtol=0.0)

    # bf16 input exercises the dtype-aware (sublane packing = 16) block sizing.
    z = (4.0 * jax.random.normal(k2, (2, 8, 32), dtype=jnp.float32)).astype(jnp.bfloat16)
    out3 = jax.block_until_ready(hardtanh(z))
    ref3 = jnp.clip(z, jnp.bfloat16(-1.0), jnp.bfloat16(1.0))
    assert out3.shape == z.shape and out3.dtype == z.dtype
    assert jnp.array_equal(out3, ref3)

    print("KERNEL_OK")
</pallas_src>

<mosaic_0001>
module attributes {stable_mosaic.version = 11 : i64} {
  func.func @_hardtanh_kernel(%arg0: i32, %arg1: memref<8x128xf32, #tpu.memory_space<vmem>>, %arg2: memref<8x128xf32, #tpu.memory_space<vmem>>) attributes {dimension_semantics = [#tpu.dimension_semantics<parallel>], iteration_bounds = array<i64: 2>, scalar_prefetch = 0 : i64, scratch_operands = 0 : i64, tpu.core_type = #tpu.core_type<tc>, window_params = [{transform_indices = @transform_0, window_bounds = array<i64: 8, 128>}, {transform_indices = @transform_1, window_bounds = array<i64: 8, 128>}]} {
    %c0 = arith.constant 0 : index
    %c0_0 = arith.constant 0 : index
    %0 = vector.load %arg1[%c0, %c0_0] : memref<8x128xf32, #tpu.memory_space<vmem>>, vector<8x128xf32>
    %cst = arith.constant -1.000000e+00 : f32
    %1 = vector.broadcast %cst : f32 to vector<8x128xf32>
    %2 = arith.maximumf %0, %1 : vector<8x128xf32>
    %cst_1 = arith.constant 1.000000e+00 : f32
    %3 = vector.broadcast %cst_1 : f32 to vector<8x128xf32>
    %4 = arith.minimumf %2, %3 : vector<8x128xf32>
    %c0_2 = arith.constant 0 : index
    %c0_3 = arith.constant 0 : index
    %5 = vector.load %arg2[%c0_2, %c0_3] : memref<8x128xf32, #tpu.memory_space<vmem>>, vector<8x128xf32>
    tpu.vector_store %arg2[%c0_2, %c0_3], %4 {strides = array<i32>} : memref<8x128xf32, #tpu.memory_space<vmem>>, vector<8x128xf32>,
    return
  }
  func.func @transform_0(%arg0: i32) -> (i32, i32) {
    %c0_i32 = arith.constant 0 : i32
    %c0_i32_0 = arith.constant 0 : i32
    return %arg0, %c0_i32 : i32, i32
  }
  func.func @transform_1(%arg0: i32) -> (i32, i32) {
    %c0_i32 = arith.constant 0 : i32
    %c0_i32_0 = arith.constant 0 : i32
    return %arg0, %c0_i32 : i32, i32
  }
}

</mosaic_0001>

<bundles_post_ra>
// kernel: tpu_custom_call.1
= control target key start
LH: loop header
LB: loop body
LE: loop exit
PB: predicated region body
PF: predicated region fallthrough
CT: control target
= control target key end

     0   :  { %6 = vsyncpa [#allocation3], 0  ;;  %s518_s0 = inlined_call_operand.hbm [shape: f32[16,128], index: 0, kind: input, shape index: {}]   ;;  %s519_s1 = inlined_call_operand.hbm [shape: f32[16,128], index: 1, kind: output, shape index: {}]  }
   0x1   :  { %8 = vsyncpa [#allocation3 + $0x1], 0 }
   0x2   :  { %9 = vsyncpa [#allocation4], 0 }
   0x3   :  { %11 = vsyncpa [#allocation4 + $0x1], 0  ;;  %s391_s6 = smov 0   ;;  %s393_s7 = smov 0  }
   0x4   :  { %s395_s8 = smov 0   ;;  %s397_s9 = smov 0  }
   0x5 LB: > { %s412_s10 = sadd.s32 4294967295, %s379_s9   ;;  %s224_s11 = sadd.s32 4294967294, %s379_s9   ;;  %s379_s9 = sphi %s397_s9, %s529_s9   ;;  %s375_s8 = sphi %s395_s8, %s528_s8   ;;  %s371_s7 = sphi %s393_s7, %s527_s7   ;;  %s367_s6 = sphi %s391_s6, %s526_s6  }
   0x6   : > { %s416_s12 = sadd.s32 1, %s379_s9   ;;  %s24_s13 = sadd.s32 1, %s375_s8 }
   0x7   : > { %s21_s14 = ssub.s32 %s379_s9, %s416_s12  ;;  %p31_p0 = scmp.ne.s32.totalorder %s375_s8, %s371_s7 }
   0x8   : > { %p22_p1 = scmp.eq.s32.totalorder %s21_s14, 0  ;;  %p32_p2 = scmp.eq.s32.totalorder %s379_s9, 0 }
   0x9   : > { %p37_p3 = scmp.ne.s32.totalorder %s371_s7, %s367_s6  ;;  %p38_p4 = scmp.eq.s32.totalorder %s412_s10, 0 }
   0xa   : > { %s428_s15 = scalar_select %p22_p1, %s375_s8, %s24_s13  }
   0xb   : > { %p430_p5 = por %p32_p2, %p31_p0  ;;  %p434_p6 = por %p38_p4, %p37_p3 }
   0xc   : > { %p61_p7 = scmp.eq.s32.totalorder %s412_s10, 1  ;;  %p67_p8 = scmp.eq.s32.totalorder %s224_s11, 1 }
   0xd   : > { %p249_p10 = scmp.lt.s32.totalorder %s379_s9, 2  ;;  %s87_s20 = sand.u32 1, %s375_s8  }
   0xe   : > { %p441_p11 = por %p61_p7, %p31_p0  ;;  %p445_p12 = por %p67_p8, %p37_p3 }
   0xf   : > { %s228_s21 = sshll.u32 %s379_s9, 3  ;;  %s227_s22 = sshll.u32 %s87_s20, 3 }
  0x10   : > { %s95_s25 = scalar_lea.hbm %s518_s0, %s228_s21  ;;  %s91_s27 = scalar_lea.vmem [#allocation2], %s227_s22 }
  0x11   : > { %s97_s26 = sshll.u32 %s95_s25, 4  ;;  %s99_s28 = sshll.u32 %s91_s27, 4  ;;  %s98_s26 = int_to_ptr.hbm [resolvable:$true] %s97_s26  ;;  %s100_s28 = int_to_ptr.vmem [resolvable:$true] %s99_s28 }
  0x12   : > { %p456_p13 = pnand %p249_p10, %p430_p5  ;;  %p229_p0 = scmp.ge.s32.totalorder %s379_s9, 1 }
  0x13   : > { %p104_p1 = scmp.lt.s32.totalorder %s379_s9, 3  ;;  %s88_s30 = scalar_lea.sflag [#allocation3], %s87_s20 }
  0x14   : > { %s283_s2 = sshra.s32 %s98_s26, 4  ;;  %p287_p3 = pneg %p456_p13  ;;  %s284_s2 = int_to_ptr.hbm [resolvable:$true] %s283_s2 }
  0x15   : > { %s285_s3 = scalar_lea.hbm %s284_s2, 8  ;;  %s290_s11 = scalar_lea.hbm %s518_s0, 16 }
  0x16   : > { %p286_p2 = scmp.ne.s32.totalorder %s284_s2, %s285_s3  ;;  %p291_p5 = scmp.lt.s32.totalorder %s284_s2, %s518_s0 }
  0x17   : > { %p292_p8 = scmp.lt.s32.totalorder %s290_s11, %s285_s3 }
  0x18   : > { %p288_p4 = pnand %p287_p3, %p286_p2 }
  0x19   : > { %p293_p10 = por %p292_p8, %p291_p5 }
  0x1a   : > { %p289_p7 = pneg %p288_p4 }
  0x1c   : > { %p294_p9 = pnand %p293_p10, %p289_p7 }
  0x1e   : > { %297 = shalt.err (!%p294_p9)
}
  0x1f   : > { %244 = dma.hbm_to_vmem [thread:$0]  (!%p456_p13), %s98_s26, 128, %s100_s28, %s88_s30  }
  0x20   : > { %p105_p2 = pnand %p229_p0, %p104_p1 }
  0x21   : > { %s477_s16 = sand.u32 (!%p105_p2), 1, %s371_s7  }
  0x22   : > { %108 = sbr.rel (%p105_p2) target bundleno = 55 (0x37), region = 24  ;;  %s230_s20 = sshll.u32 (!%p105_p2), %s477_s16, 3 }
  0x23   : > { %s111_s21 = scalar_lea.sflag (!%p105_p2), [#allocation3], %s477_s16  ;;  %s114_s22 = scalar_lea.vmem (!%p105_p2), [#allocation2], %s230_s20 }
  0x27   : > { %358 = dma.done.wait (%p434_p6), %s111_s21, 128  }
  0x28   : > { %360 = vsyncadd (%p434_p6), %s111_s21, 4294967168  ;;  %s234_s23 = sshll.u32 %s412_s10, 3  ;;  %s133_s27 = scalar_lea.vmem [#allocation5], %s230_s20  ;;  %v134_v0 = vld [vmem:[%s114_s22] sm:$0xff] }
  0x29   : > { %s149_s26 = scalar_lea.hbm %s519_s1, %s234_s23  ;;  %s151_s28 = sshll.u32 %s133_s27, 4  ;;  %v232_v1 = vclamps-f32 %v134_v0, 1.0  ;;  %s152_s28 = int_to_ptr.vmem [resolvable:$true] %s151_s28 }
  0x2a   : > { %s153_s29 = sshll.u32 %s149_s26, 4  ;;  %s139_s30 = scalar_lea.sflag [#allocation4], %s477_s16  ;;  %s154_s29 = int_to_ptr.hbm [resolvable:$true] %s153_s29 }
  0x2b   : > { %137 = vst [vmem:[%s133_s27] sm:$0xff] %v232_v1  ;;  %s327_s2 = sshra.s32 %s154_s29, 4  ;;  %s333_s4 = scalar_lea.hbm %s519_s1, 16  ;;  %s328_s2 = int_to_ptr.hbm [resolvable:$true] %s327_s2 }
  0x2c   : > { %s329_s17 = scalar_lea.hbm %s328_s2, 8  ;;  %p334_p0 = scmp.lt.s32.totalorder %s328_s2, %s519_s1 }
  0x2d   : > { %p330_p6 = scmp.ne.s32.totalorder %s328_s2, %s329_s17  ;;  %p335_p1 = scmp.lt.s32.totalorder %s333_s4, %s329_s17 }
  0x2f   : > { %p331_p9 = pnand %p330_p6, %p441_p11  ;;  %p336_p3 = por %p335_p1, %p334_p0 }
  0x31   : > { %p332_p13 = pneg %p331_p9 }
  0x33   : > { %p337_p4 = pnand %p336_p3, %p332_p13 }
  0x35   : > { %340 = shalt.err (!%p337_p4)
}
  0x36   : > { %239 = dma.vmem_to_hbm [thread:$0]  (%p441_p11), %s152_s28, 128, %s154_s29, %s139_s30  }
  0x37 PF: > { %s165_s13 = sand.u32 1, %s367_s6   ;;  %p525_p7 = scmp.ge.s32.totalorder %s379_s9, 2 }
  0x38   : > { %s166_s14 = scalar_lea.sflag [#allocation4], %s165_s13 }
  0x39   : > { %p246_p5 = pnand %p525_p7, %p445_p12 }
  0x3b   : > { %p247_p8 = pneg %p246_p5 }
  0x3d   : > { %362 = dma.done.wait (%p247_p8), %s166_s14, 128  }
  0x3e   : > { %364 = vsyncadd (%p247_p8), %s166_s14, 4294967168  ;;  %p14_p10 = scmp.ge.s32.totalorder %s416_s12, 4   ;;  %s526_s6 = smov %s371_s7 }
  0x3f   : > { %s527_s7 = smov %s375_s8  ;;  %s528_s8 = smov %s428_s15 }
  0x40   : > { %s529_s9 = smov %s416_s12  ;;  %16 = sbr.rel (!%p14_p10) target bundleno = 5 (0x5), region = 69 }
  0x45   :  { %172 = vsyncpa [#allocation3], 1 }
  0x46   :  { %174 = vsyncpa [#allocation3 + $0x1], 1 }
  0x47   :  { %175 = vsyncpa [#allocation4], 1 }
  0x48   :  { %177 = vsyncpa [#allocation4 + $0x1], 1 }

</bundles_post_ra>
